<compile_context>
chip_gen: v5e
topology: v5e:2x2
jax: 0.10.0
libtpu: 0.0.40
codegen_flags: <defaults>
</compile_context>

<pallas_src>
import functools

import jax
import jax.numpy as jnp
from jax.experimental import pallas as pl
from jax.experimental.pallas import tpu as pltpu


_VMEM_LIMIT = 32 * 1024 * 1024  # safe on v5e(128M phys)/v6e(128M)/v7x(64M)
_LEAKY_SLOPE = 0.05             # matches F.leaky_relu(x, 0.05) in the spec
_BN_EPS = 1e-5


def _round_up(x, m):
    return (x + m - 1) // m * m


def _grid_tm(m, tm):
    """Effective tile rows + number of grid steps along M."""
    if m <= tm:
        return m, 1
    return tm, pl.cdiv(m, tm)


# ----------------------------------------------------------------------------
# Kernels
# ----------------------------------------------------------------------------
def _mm_act_kernel(p_ref, w_ref, b_ref, o_ref, *, act):
    """Fused (patches @ W + bias) + activation, one M tile per grid step."""
    x = jnp.dot(p_ref[...], w_ref[...], preferred_element_type=jnp.float32)
    x = x + b_ref[...]
    if act == "leaky":
        x = jnp.where(x > 0, x, _LEAKY_SLOPE * x)
    else:  # sigmoid (exact; EUP exp + reciprocal)
        x = pl.reciprocal(1.0 + jnp.exp(-x), approx=False)
    o_ref[...] = x.astype(o_ref.dtype)


def _mm_stats_kernel(p_ref, w_ref, b_ref, y_ref, s1_ref, s2_ref, *,
                     m_total, tm):
    """Pass 1 of BN layers: matmul+bias, accumulate per-channel sum / sumsq."""
    i = pl.program_id(0)
    y = jnp.dot(p_ref[...], w_ref[...], preferred_element_type=jnp.float32)
    y = y + b_ref[...]
    y_ref[...] = y

    # Mask rows beyond the true M (partial last tile) so they cannot pollute
    # the batch statistics.
    row = jax.lax.broadcasted_iota(jnp.int32, y.shape, 0) + i * tm
    ym = jnp.where(row < m_total, y, 0.0)

    @pl.when(i == 0)
    def _():
        s1_ref[...] = jnp.zeros_like(s1_ref)
        s2_ref[...] = jnp.zeros_like(s2_ref)

    s1_ref[...] += jnp.sum(ym, axis=0, keepdims=True)
    s2_ref[...] += jnp.sum(ym * ym, axis=0, keepdims=True)


def _bn_act_kernel(y_ref, s1_ref, s2_ref, g_ref, be_ref, o_ref, *, m_total):
    """Pass 2 of BN layers: normalize with batch stats + LeakyReLU."""
    y = y_ref[...]
    inv_m = 1.0 / float(m_total)
    mean = s1_ref[...] * inv_m
    var = jnp.maximum(s2_ref[...] * inv_m - mean * mean, 0.0)
    inv_std = jax.lax.rsqrt(var + _BN_EPS)
    x = (y - mean) * (inv_std * g_ref[...]) + be_ref[...]
    x = jnp.where(x > 0, x, _LEAKY_SLOPE * x)
    o_ref[...] = x.astype(o_ref.dtype)


# ----------------------------------------------------------------------------
# pallas_call wrappers
# ----------------------------------------------------------------------------
def conv_matmul_act(p, w, b, *, act, tm, out_dtype):
    M, Kp = p.shape
    Cp = w.shape[1]
    tm_eff, nt = _grid_tm(M, tm)
    kern = functools.partial(_mm_act_kernel, act=act)
    cost = pl.CostEstimate(
        flops=2 * M * Kp * Cp + 4 * M * Cp,
        transcendentals=(M * Cp if act == "sigmoid" else 0),
        bytes_accessed=p.size * 2 + w.size * 2 + 4 * Cp
        + M * Cp * jnp.dtype(out_dtype).itemsize)
    return pl.pallas_call(
        kern,
        out_shape=jax.ShapeDtypeStruct((M, Cp), out_dtype),
        grid=(nt,),
        in_specs=[
            pl.BlockSpec((tm_eff, Kp), lambda i: (i, 0)),
            pl.BlockSpec((Kp, Cp), lambda i: (0, 0)),
            pl.BlockSpec((1, Cp), lambda i: (0, 0)),
        ],
        out_specs=pl.BlockSpec((tm_eff, Cp), lambda i: (i, 0)),
        compiler_params=pltpu.CompilerParams(
            dimension_semantics=("parallel",),
            vmem_limit_bytes=_VMEM_LIMIT),
        cost_estimate=cost,
    )(p, w, b)


def conv_matmul_stats(p, w, b, *, tm):
    M, Kp = p.shape
    Cp = w.shape[1]
    tm_eff, nt = _grid_tm(M, tm)
    kern = functools.partial(_mm_stats_kernel, m_total=M, tm=tm_eff)
    cost = pl.CostEstimate(
        flops=2 * M * Kp * Cp + 6 * M * Cp,
        transcendentals=0,
        bytes_accessed=p.size * 2 + w.size * 2 + 4 * Cp + 4 * M * Cp + 8 * Cp)
    return pl.pallas_call(
        kern,
        out_shape=(
            jax.ShapeDtypeStruct((M, Cp), jnp.float32),   # pre-BN matmul out
            jax.ShapeDtypeStruct((1, Cp), jnp.float32),   # per-channel sum
            jax.ShapeDtypeStruct((1, Cp), jnp.float32),   # per-channel sumsq
        ),
        grid=(nt,),
        in_specs=[
            pl.BlockSpec((tm_eff, Kp), lambda i: (i, 0)),
            pl.BlockSpec((Kp, Cp), lambda i: (0, 0)),
            pl.BlockSpec((1, Cp), lambda i: (0, 0)),
        ],
        out_specs=(
            pl.BlockSpec((tm_eff, Cp), lambda i: (i, 0)),
            pl.BlockSpec((1, Cp), lambda i: (0, 0)),      # resident accumulator
            pl.BlockSpec((1, Cp), lambda i: (0, 0)),      # resident accumulator
        ),
        compiler_params=pltpu.CompilerParams(
            dimension_semantics=("arbitrary",),           # stats accumulate over M
            vmem_limit_bytes=_VMEM_LIMIT),
        cost_estimate=cost,
    )(p, w, b)


def bn_act(y, s1, s2, g, beta, *, m_total, tm, out_dtype=jnp.bfloat16):
    M, Cp = y.shape
    tm_eff, nt = _grid_tm(M, tm)
    kern = functools.partial(_bn_act_kernel, m_total=m_total)
    cost = pl.CostEstimate(
        flops=8 * M * Cp,
        transcendentals=Cp,
        bytes_accessed=4 * M * Cp + 16 * Cp
        + M * Cp * jnp.dtype(out_dtype).itemsize)
    return pl.pallas_call(
        kern,
        out_shape=jax.ShapeDtypeStruct((M, Cp), out_dtype),
        grid=(nt,),
        in_specs=[
            pl.BlockSpec((tm_eff, Cp), lambda i: (i, 0)),
            pl.BlockSpec((1, Cp), lambda i: (0, 0)),
            pl.BlockSpec((1, Cp), lambda i: (0, 0)),
            pl.BlockSpec((1, Cp), lambda i: (0, 0)),
            pl.BlockSpec((1, Cp), lambda i: (0, 0)),
        ],
        out_specs=pl.BlockSpec((tm_eff, Cp), lambda i: (i, 0)),
        compiler_params=pltpu.CompilerParams(
            dimension_semantics=("parallel",),
            vmem_limit_bytes=_VMEM_LIMIT),
        cost_estimate=cost,
    )(y, s1, s2, g, beta)


# ----------------------------------------------------------------------------
# Host glue: im2col (NHWC), K zero-padded to the kernel's lane-aligned width.
# ----------------------------------------------------------------------------
def im2col(x_nhwc, k, stride, pad, k_pad):
    N, H, W, C = x_nhwc.shape
    xp = jnp.pad(x_nhwc, ((0, 0), (pad, pad), (pad, pad), (0, 0)))
    OH = (H + 2 * pad - k) // stride + 1
    OW = (W + 2 * pad - k) // stride + 1
    cols = []
    for i in range(k):
        for j in range(k):
            cols.append(xp[:, i:i + stride * OH:stride,
                            j:j + stride * OW:stride, :])
    p = jnp.stack(cols, axis=3).reshape(N * OH * OW, k * k * C)
    K = k * k * C
    if k_pad > K:
        p = jnp.pad(p, ((0, 0), (0, k_pad - K)))
    return p, N, OH, OW


# ----------------------------------------------------------------------------
# Discriminator (parameters initialized deterministically in-script)
# ----------------------------------------------------------------------------
class Discriminator:
    def __init__(self, image_size, conv_dim=64, key=None, tm=512):
        if key is None:
            key = jax.random.PRNGKey(0)
        cd = conv_dim
        cfgs = [
            # (cin, cout, k, stride, pad, bn, act)
            (3,      cd,     4,                   2, 1, False, "leaky"),
            (cd,     cd * 2, 4,                   2, 1, True,  "leaky"),
            (cd * 2, cd * 4, 4,                   2, 1, True,  "leaky"),
            (cd * 4, cd * 8, 4,                   2, 1, True,  "leaky"),
            (cd * 8, 1,      int(image_size / 16), 1, 0, False, "sigmoid"),
        ]
        self.tm = tm
        self.layers = []
        for li, (cin, cout, k, s, p, bn, act) in enumerate(cfgs):
            wkey = jax.random.fold_in(key, li)
            # PyTorch conv weight (Cout, Cin, KH, KW) -> HWIO
            w_oihw = 0.02 * jax.random.normal(wkey, (cout, cin, k, k),
                                              jnp.float32)
            w_hwio = jnp.transpose(w_oihw, (2, 3, 1, 0))
            K = k * k * cin
            Kp = _round_up(K, 128)
            Cp = _round_up(cout, 128)
            w2d = jnp.zeros((Kp, Cp), jnp.float32)
            w2d = w2d.at[:K, :cout].set(w_hwio.reshape(K, cout))
            self.layers.append(dict(
                w=w2d.astype(jnp.bfloat16),
                b=jnp.zeros((1, Cp), jnp.float32),
                g=jnp.ones((1, Cp), jnp.float32),     # BN gamma init
                beta=jnp.zeros((1, Cp), jnp.float32),  # BN beta init
                w_hwio=w_hwio,                         # pure-JAX reference only
                k=k, stride=s, pad=p, bn=bn, act=act,
                cout=cout, kp=Kp, cp=Cp))

    def __call__(self, x_nchw):
        # NCHW -> NHWC; bf16 activations between layers (halves HBM traffic).
        x = jnp.transpose(x_nchw, (0, 2, 3, 1)).astype(jnp.bfloat16)
        for L in self.layers:
            p, N, OH, OW = im2col(x, L["k"], L["stride"], L["pad"], L["kp"])
            if L["bn"]:
                y, s1, s2 = conv_matmul_stats(p, L["w"], L["b"], tm=self.tm)
                out = bn_act(y, s1, s2, L["g"], L["beta"],
                             m_total=p.shape[0], tm=self.tm)
            else:
                out_dtype = (jnp.float32 if L["act"] == "sigmoid"
                             else jnp.bfloat16)
                out = conv_matmul_act(p, L["w"], L["b"], act=L["act"],
                                      tm=self.tm, out_dtype=out_dtype)
            # strip channel padding before feeding the next layer
            x = out[:, :L["cout"]].reshape(N, OH, OW, L["cout"])
        # (N,1,1,1) -> torch .squeeze() removes all size-1 dims
        return jnp.squeeze(x.astype(jnp.float32))


# ----------------------------------------------------------------------------
# Pure-JAX reference (f32) for correctness checking.
# NOTE: BatchNorm is training-mode (biased batch stats); running stats are not
# tracked, matching a single forward pass of the PyTorch module in train().
# ----------------------------------------------------------------------------
def reference_forward(x_nchw, layers):
    x = jnp.transpose(x_nchw, (0, 2, 3, 1)).astype(jnp.float32)
    for L in layers:
        s, pad = L["stride"], L["pad"]
        y = jax.lax.conv_general_dilated(
            x, L["w_hwio"].astype(jnp.float32), (s, s),
            [(pad, pad), (pad, pad)],
            dimension_numbers=("NHWC", "HWIO", "NHWC"))
        if L["bn"]:
            m = jnp.mean(y, axis=(0, 1, 2), keepdims=True)
            v = jnp.mean(jnp.square(y - m), axis=(0, 1, 2), keepdims=True)
            y = (y - m) * jax.lax.rsqrt(v + _BN_EPS)   # gamma=1, beta=0
        if L["act"] == "leaky":
            y = jnp.where(y > 0, y, _LEAKY_SLOPE * y)
        else:
            y = jax.nn.sigmoid(y)
        x = y
    return jnp.squeeze(x)


# ----------------------------------------------------------------------------
if __name__ == "__main__":
    image_size = 32   # -> fc kernel = image_size/16 = 2, final map 1x1
    conv_dim = 8      # small synthetic width
    batch = 2

    key = jax.random.PRNGKey(0)
    x = jax.random.normal(jax.random.fold_in(key, 100),
                          (batch, 3, image_size, image_size), jnp.float32)

    # tm=256 so the first layer (M = 2*16*16 = 512) exercises the tiled grid.
    model = Discriminator(image_size, conv_dim=conv_dim, key=key, tm=256)
    out = jax.block_until_ready(model(x))

    assert out.shape == (batch,), out.shape
    assert bool(jnp.all(jnp.isfinite(out)))
    assert bool(jnp.all((out >= 0.0) & (out <= 1.0)))

    ref = jax.block_until_ready(reference_forward(x, model.layers))
    assert float(jnp.max(jnp.abs(out - ref))) < 5e-2, (out, ref)

    print("KERNEL_OK")
</pallas_src>

<mosaic_0001>
module attributes {stable_mosaic.version = 11 : i64} {
  func.func @_mm_act_kernel(%arg0: i32, %arg1: memref<256x128xbf16, #tpu.memory_space<vmem>>, %arg2: memref<128x128xbf16, #tpu.memory_space<vmem>>, %arg3: memref<1x128xf32, #tpu.memory_space<vmem>>, %arg4: memref<256x128xbf16, #tpu.memory_space<vmem>>) attributes {dimension_semantics = [#tpu.dimension_semantics<parallel>], iteration_bounds = array<i64: 2>, scalar_prefetch = 0 : i64, scratch_operands = 0 : i64, tpu.core_type = #tpu.core_type<tc>, window_params = [{transform_indices = @transform_0, window_bounds = array<i64: 256, 128>}, {pipeline_mode = #tpu.pipeline_mode<synchronous>, transform_indices = @transform_1, window_bounds = array<i64: 128, 128>}, {pipeline_mode = #tpu.pipeline_mode<synchronous>, transform_indices = @transform_2, window_bounds = array<i64: 1, 128>}, {transform_indices = @transform_3, window_bounds = array<i64: 256, 128>}]} {
    %c0 = arith.constant 0 : index
    %c0_0 = arith.constant 0 : index
    %0 = vector.load %arg1[%c0, %c0_0] : memref<256x128xbf16, #tpu.memory_space<vmem>>, vector<256x128xbf16>
    %c0_1 = arith.constant 0 : index
    %c0_2 = arith.constant 0 : index
    %1 = vector.load %arg2[%c0_1, %c0_2] : memref<128x128xbf16, #tpu.memory_space<vmem>>, vector<128x128xbf16>
    %cst = arith.constant dense<0.000000e+00> : vector<256x128xf32>
    %2 = tpu.matmul %0, %1, %cst {dimension_numbers = #tpu.dot_dimension_numbers<[1], [0], [0], [1], [0, 0, 1, 1], [], []>} : vector<256x128xbf16>, vector<128x128xbf16>, vector<256x128xf32> -> vector<256x128xf32>
    %c0_3 = arith.constant 0 : index
    %c0_4 = arith.constant 0 : index
    %3 = vector.load %arg3[%c0_3, %c0_4] : memref<1x128xf32, #tpu.memory_space<vmem>>, vector<1x128xf32>
    %4 = vector.broadcast %3 : vector<1x128xf32> to vector<256x128xf32>
    %5 = arith.addf %2, %4 : vector<256x128xf32>
    %cst_5 = arith.constant 0.000000e+00 : f32
    %6 = vector.broadcast %cst_5 : f32 to vector<256x128xf32>
    %7 = arith.cmpf ogt, %5, %6 : vector<256x128xf32>
    %cst_6 = arith.constant 5.000000e-02 : f32
    %8 = vector.broadcast %cst_6 : f32 to vector<256x128xf32>
    %9 = arith.mulf %8, %5 : vector<256x128xf32>
    %10 = arith.select %7, %5, %9 : vector<256x128xi1>, vector<256x128xf32>
    %11 = arith.truncf %10 : vector<256x128xf32> to vector<256x128xbf16>
    %c0_7 = arith.constant 0 : index
    %c0_8 = arith.constant 0 : index
    %12 = vector.load %arg4[%c0_7, %c0_8] : memref<256x128xbf16, #tpu.memory_space<vmem>>, vector<256x128xbf16>
    tpu.vector_store %arg4[%c0_7, %c0_8], %11 {strides = array<i32>} : memref<256x128xbf16, #tpu.memory_space<vmem>>, vector<256x128xbf16>,
    return
  }
  func.func @transform_0(%arg0: i32) -> (i32, i32) {
    %c0_i32 = arith.constant 0 : i32
    %c0_i32_0 = arith.constant 0 : i32
    return %arg0, %c0_i32 : i32, i32
  }
  func.func @transform_1(%arg0: i32) -> (i32, i32) {
    %c0_i32 = arith.constant 0 : i32
    %c0_i32_0 = arith.constant 0 : i32
    %c0_i32_1 = arith.constant 0 : i32
    return %c0_i32, %c0_i32_0 : i32, i32
  }
  func.func @transform_2(%arg0: i32) -> (i32, i32) {
    %c0_i32 = arith.constant 0 : i32
    %c0_i32_0 = arith.constant 0 : i32
    %c0_i32_1 = arith.constant 0 : i32
    return %c0_i32, %c0_i32_0 : i32, i32
  }
  func.func @transform_3(%arg0: i32) -> (i32, i32) {
    %c0_i32 = arith.constant 0 : i32
    %c0_i32_0 = arith.constant 0 : i32
    return %arg0, %c0_i32 : i32, i32
  }
}

</mosaic_0001>

<bundles_post_ra>
// kernel: tpu_custom_call.1
= control target key start
LH: loop header
LB: loop body
LE: loop exit
PB: predicated region body
PF: predicated region fallthrough
CT: control target
= control target key end

     0   :  { %8 = vsyncpa [#allocation3], 0  ;;  %s1452_s0 = inlined_call_operand.hbm [shape: bf16[512,128], index: 0, kind: input, shape index: {}]   ;;  %s1453_s1 = inlined_call_operand.hbm [shape: bf16[128,128], index: 1, kind: input, shape index: {}]   ;;  %s1454_s2 = inlined_call_operand.vmem [shape: f32[1,128], index: 2, kind: input, shape index: {}]   ;;  %s1455_s3 = inlined_call_operand.hbm [shape: bf16[512,128], index: 3, kind: output, shape index: {}]  }
   0x1   :  { %10 = vsyncpa [#allocation3 + $0x1], 0 }
   0x2   :  { %11 = vsyncpa [#allocation6], 0 }
   0x3   :  { %12 = vsyncpa [#allocation4], 0 }
   0x4   :  { %14 = vsyncpa [#allocation4 + $0x1], 0  ;;  %s1230_s12 = smov 0   ;;  %s1232_s13 = smov 0  }
   0x5   :  { %s1234_s14 = smov 0   ;;  %s1236_s15 = smov 0  }
   0x6 LB: > { %s1251_s16 = sadd.s32 4294967295, %s1203_s15   ;;  %s754_s17 = sadd.s32 4294967294, %s1203_s15   ;;  %s1203_s15 = sphi %s1236_s15, %s1465_s15   ;;  %s1199_s14 = sphi %s1234_s14, %s1464_s14   ;;  %s1195_s13 = sphi %s1232_s13, %s1463_s13   ;;  %s1191_s12 = sphi %s1230_s12, %s1462_s12  }
   0x7   : > { %p40_p0 = scmp.ne.s32.totalorder %s1195_s13, %s1191_s12  ;;  %p41_p1 = scmp.eq.s32.totalorder %s1251_s16, 0 }
   0x8   : > { %p106_p2 = scmp.eq.s32.totalorder %s1251_s16, 1  ;;  %p112_p3 = scmp.eq.s32.totalorder %s754_s17, 1 }
   0x9   : > { %p1260_p4 = por %p41_p1, %p40_p0  ;;  %p755_p5 = scmp.ge.s32.totalorder %s1203_s15, 1 }
   0xa   : > { %p1265_p6 = por %p112_p3, %p40_p0  ;;  %p119_p7 = scmp.lt.s32.totalorder %s1203_s15, 3 }
   0xb   : > { %s130_s22 = sshll.u32 %s1453_s1, 4  ;;  %s1205_s24 = smov [#allocation5]   ;;  %s131_s22 = int_to_ptr.hbm [resolvable:$true] %s130_s22 }
   0xc   : > { %p1273_p8 = pnand %p755_p5, %p119_p7  ;;  %s132_s25 = sshll.u32 %s1205_s24, 4  ;;  %s133_s25 = int_to_ptr.vmem [resolvable:$true] %s132_s25 }
   0xd   : > { %s1283_s26 = sadd.s32 1, %s1203_s15   ;;  %s1206_s27 = smov 64  }
   0xe   : > { %p1019_p9 = pneg %p1273_p8  ;;  %s1207_s28 = smov 4  }
   0xf   : > { %s24_s29 = ssub.s32 %s1203_s15, %s1283_s26  ;;  %s27_s30 = sadd.s32 1, %s1199_s14 }
  0x10   : > { %p1020_p10 = pnand %p1019_p9, %p41_p1  ;;  %p25_p12 = scmp.eq.s32.totalorder %s24_s29, 0 }
  0x11   : > { %p34_p13 = scmp.ne.s32.totalorder %s1199_s14, %s1195_s13  ;;  %p35_p0 = scmp.eq.s32.totalorder %s1203_s15, 0 }
  0x12   : > { %1022 = dma.hbm_to_vmem [thread:$0]  (!%p1020_p10), %s131_s22, 1024, %s133_s25, [#allocation6], %s1206_s27, %s1206_s27, %s1207_s28  }
  0x13   : > { %s1295_s4 = scalar_select %p25_p12, %s1199_s14, %s27_s30  }
  0x14   : > { %p1299_p3 = por %p106_p2, %p34_p13  ;;  %p1032_p5 = scmp.lt.s32.totalorder %s1203_s15, 2 }
  0x15   : > { %s149_s6 = sand.u32 1, %s1199_s14   ;;  %s866_s7 = sshll.u32 %s1203_s15, 7 }
  0x16   : > { %p36_p7 = por %p35_p0, %p34_p13  ;;  %s758_s8 = sshll.u32 %s149_s6, 7 }
  0x17   : > { %s158_s11 = scalar_lea.hbm %s1452_s0, %s866_s7  ;;  %s153_s20 = scalar_lea.vmem [#allocation2], %s758_s8 }
  0x18   : > { %s159_s17 = sshll.u32 %s158_s11, 4  ;;  %s161_s21 = sshll.u32 %s153_s20, 4  ;;  %s160_s17 = int_to_ptr.hbm [resolvable:$true] %s159_s17  ;;  %s162_s21 = int_to_ptr.vmem [resolvable:$true] %s161_s21 }
  0x19   : > { %p1309_p9 = pnand %p1032_p5, %p36_p7  ;;  %s150_s24 = scalar_lea.sflag [#allocation3], %s149_s6 }
  0x1a   : > { %s1103_s25 = sshra.s32 %s160_s17, 4  ;;  %s1110_s8 = scalar_lea.hbm %s1452_s0, 256  ;;  %s1104_s25 = int_to_ptr.hbm [resolvable:$true] %s1103_s25 }
  0x1b   : > { %s1105_s29 = scalar_lea.hbm %s1104_s25, 128  ;;  %p1107_p10 = pneg %p1309_p9 }
  0x1c   : > { %p1106_p2 = scmp.ne.s32.totalorder %s1104_s25, %s1105_s29  ;;  %p1111_p0 = scmp.lt.s32.totalorder %s1104_s25, %s1452_s0 }
  0x1d   : > { %p1112_p5 = scmp.lt.s32.totalorder %s1110_s8, %s1105_s29 }
  0x1e   : > { %p1108_p12 = pnand %p1107_p10, %p1106_p2 }
  0x1f   : > { %p1113_p7 = por %p1112_p5, %p1111_p0 }
  0x20   : > { %p1109_p13 = pneg %p1108_p12 }
  0x22   : > { %p1114_p11 = pnand %p1113_p7, %p1109_p13 }
  0x24   : > { %1117 = shalt.err (!%p1114_p11)
}
  0x25   : > { %1026 = dma.hbm_to_vmem [thread:$0]  (!%p1309_p9), %s160_s17, 2048, %s162_s21, %s150_s24, %s1206_s27, %s1206_s27, %s1207_s28  }
  0x26   : > { %173 = sbr.rel (%p1273_p8) target bundleno = 279 (0x117), region = 32  ;;  %s1329_s6 = sand.u32 (!%p1273_p8), 1, %s1195_s13  }
  0x27   : > { %s762_s11 = sshll.u32 (!%p1273_p8), %s1329_s6, 7  ;;  %s176_s20 = scalar_lea.sflag (!%p1273_p8), [#allocation3], %s1329_s6 }
  0x28   : > { %s1335_s25 = scalar_lea.vmem (!%p1273_p8), [#allocation2], %s762_s11 }
  0x2b   : > { %1178 = dma.done.wait (%p1260_p4), %s176_s20, 2048  }
  0x2c   : > { %1180 = vsyncadd (%p1260_p4), %s176_s20, 4294965248 }
  0x2d   : > { %1182 = dma.done.wait (%p41_p1), [#allocation6], 1024  }
  0x2e   : > { %1184 = vsyncadd (%p41_p1), [#allocation6], 4294966272  ;;  %v890_v0 = vld [vmem:[#allocation5 + $0x38] sm:$0xff]  ;;  %v889_v1 = vld [vmem:[#allocation5 + $0x30] sm:$0xff]  ;;  %s1374_s27 = scalar_lea.vmem [#allocation7], %s762_s11  ;;  %s891_s28 = sshll.u32 %s1251_s16, 7 }
  0x2f   : > { %406 = vmatpush.bf16.msra.mxu0 %v890_v0  ;;  %987 = vmatpush.bf16.msra.mxu1 %v890_v0  ;;  %v888_v2 = vld [vmem:[#allocation5 + $0x28] sm:$0xff]  ;;  %v887_v3 = vld [vmem:[#allocation5 + $0x20] sm:$0xff]  ;;  %v886_v4 = vld [vmem:[#allocation5 + $0x18] sm:$0xff]  ;;  %s667_s16 = scalar_lea.hbm %s1455_s3, %s891_s28  ;;  %s668_s22 = sshll.u32 %s1374_s27, 4  ;;  %s669_s22 = int_to_ptr.vmem [resolvable:$true] %s668_s22 }
  0x30   : > { %988 = vmatpush.bf16.msra.mxu2 %v890_v0  ;;  %989 = vmatpush.bf16.msra.mxu3 %v890_v0  ;;  %v885_v5 = vld [vmem:[#allocation5 + $0x10] sm:$0xff]  ;;  %v884_v6 = vld [vmem:[#allocation5 + $0x8] sm:$0xff]  ;;  %v883_v7 = vld [vmem:[#allocation5] sm:$0xff]  ;;  %s670_s24 = sshll.u32 %s667_s16, 4  ;;  %s656_s29 = scalar_lea.sflag [#allocation4], %s1329_s6  ;;  %s671_s24 = int_to_ptr.hbm [resolvable:$true] %s670_s24 }
  0x31   : > { %v867_v8 = vld [vmem:[%s1335_s25] sm:$0xff]  ;;  %v868_v12 = vld [vmem:[%s1335_s25 + $0x8] sm:$0xff]  ;;  %v869_v16 = vld [vmem:[%s1335_s25 + $0x10] sm:$0xff]  ;;  %s1147_s30 = sshra.s32 %s671_s24, 4  ;;  %s1153_s10 = scalar_lea.hbm %s1455_s3, 256  ;;  %s1148_s30 = int_to_ptr.hbm [resolvable:$true] %s1147_s30 }
  0x32   : > { %v871_v9 = vld [vmem:[%s1335_s25 + $0x20] sm:$0xff]  ;;  %v872_v13 = vld [vmem:[%s1335_s25 + $0x28] sm:$0xff]  ;;  %v873_v17 = vld [vmem:[%s1335_s25 + $0x30] sm:$0xff]  ;;  %s1149_s7 = scalar_lea.hbm %s1148_s30, 128  ;;  %p1154_p11 = scmp.lt.s32.totalorder %s1148_s30, %s1455_s3 }
  0x33   : > { %407 = vmatpush.bf16.msra.mxu0 %v889_v1  ;;  %990 = vmatpush.bf16.msra.mxu1 %v889_v1  ;;  %v875_v10 = vld [vmem:[%s1335_s25 + $0x40] sm:$0xff]  ;;  %v876_v14 = vld [vmem:[%s1335_s25 + $0x48] sm:$0xff]  ;;  %v877_v18 = vld [vmem:[%s1335_s25 + $0x50] sm:$0xff]  ;;  %p1150_p1 = scmp.ne.s32.totalorder %s1148_s30, %s1149_s7  ;;  %p1155_p9 = scmp.lt.s32.totalorder %s1153_s10, %s1149_s7 }
  0x34   : > { %991 = vmatpush.bf16.msra.mxu2 %v889_v1  ;;  %992 = vmatpush.bf16.msra.mxu3 %v889_v1  ;;  %v879_v11 = vld [vmem:[%s1335_s25 + $0x60] sm:$0xff]  ;;  %v880_v15 = vld [vmem:[%s1335_s25 + $0x68] sm:$0xff]  ;;  %v881_v19 = vld [vmem:[%s1335_s25 + $0x70] sm:$0xff] }
  0x35   : > { %v870_v20 = vld [vmem:[%s1335_s25 + $0x18] sm:$0xff]  ;;  %v1364_v26 = vld [vmem:[%s1454_s2] ss:$0 sm:$0xff]  ;;  %p1151_p4 = pnand %p1150_p1, %p1299_p3  ;;  %p1156_p2 = por %p1155_p9, %p1154_p11 }
  0x36   : > { %v874_v21 = vld [vmem:[%s1335_s25 + $0x38] sm:$0xff] }
  0x37   : > { %408 = vmatpush.bf16.msra.mxu0 %v888_v2  ;;  %993 = vmatpush.bf16.msra.mxu1 %v888_v2  ;;  %v878_v22 = vld [vmem:[%s1335_s25 + $0x58] sm:$0xff]  ;;  %p1152_p8 = pneg %p1151_p4 }
  0x38   : > { %994 = vmatpush.bf16.msra.mxu2 %v888_v2  ;;  %995 = vmatpush.bf16.msra.mxu3 %v888_v2  ;;  %v882_v23 = vld [vmem:[%s1335_s25 + $0x78] sm:$0xff] }
  0x39   : > { %p1157_p10 = pnand %p1156_p2, %p1152_p8 }
  0x3b   : > { %409 = vmatpush.bf16.msra.mxu0 %v887_v3  ;;  %996 = vmatpush.bf16.msra.mxu1 %v887_v3 }
  0x3c   : > { %997 = vmatpush.bf16.msra.mxu2 %v887_v3  ;;  %998 = vmatpush.bf16.msra.mxu3 %v887_v3 }
  0x3f   : > { %410 = vmatpush.bf16.msra.mxu0 %v886_v4  ;;  %999 = vmatpush.bf16.msra.mxu1 %v886_v4 }
  0x40   : > { %1000 = vmatpush.bf16.msra.mxu2 %v886_v4  ;;  %1001 = vmatpush.bf16.msra.mxu3 %v886_v4 }
  0x43   : > { %411 = vmatpush.bf16.msra.mxu0 %v885_v5  ;;  %1002 = vmatpush.bf16.msra.mxu1 %v885_v5 }
  0x44   : > { %1003 = vmatpush.bf16.msra.mxu2 %v885_v5  ;;  %1004 = vmatpush.bf16.msra.mxu3 %v885_v5 }
  0x47   : > { %412 = vmatpush.bf16.msra.mxu0 %v884_v6  ;;  %1005 = vmatpush.bf16.msra.mxu1 %v884_v6 }
  0x48   : > { %1006 = vmatpush.bf16.msra.mxu2 %v884_v6  ;;  %1007 = vmatpush.bf16.msra.mxu3 %v884_v6 }
  0x4b   : > { %413 = vmatpush.bf16.msra.mxu0 %v883_v7  ;;  %1008 = vmatpush.bf16.msra.mxu1 %v883_v7 }
  0x4c   : > { %1009 = vmatpush.bf16.msra.mxu2 %v883_v7  ;;  %1010 = vmatpush.bf16.msra.mxu3 %v883_v7 }
  0x4e   : > { %414 = vmatmul.bf16.vlgmr.msra.gmra.mxu0 %v867_v8  ;;  %434 = vmatmul.bf16.vlgmr.msra.gmra.mxu1 %v871_v9 }
  0x4f   : > { %454 = vmatmul.bf16.vlgmr.msra.gmra.mxu2 %v875_v10  ;;  %474 = vmatmul.bf16.vlgmr.msra.gmra.mxu3 %v879_v11 }
  0x5e   : > { %419 = vmatmul.bf16.gmra.mxu0 %v868_v12  ;;  %439 = vmatmul.bf16.gmra.mxu1 %v872_v13 }
  0x5f   : > { %459 = vmatmul.bf16.gmra.mxu2 %v876_v14  ;;  %479 = vmatmul.bf16.gmra.mxu3 %v880_v15 }
  0x6e   : > { %424 = vmatmul.bf16.gmra.mxu0 %v869_v16  ;;  %444 = vmatmul.bf16.gmra.mxu1 %v873_v17 }
  0x6f   : > { %464 = vmatmul.bf16.gmra.mxu2 %v877_v18  ;;  %484 = vmatmul.bf16.gmra.mxu3 %v881_v19 }
  0x7e   : > { %429 = vmatmul.bf16.gmra.mxu0 %v870_v20  ;;  %449 = vmatmul.bf16.gmra.mxu1 %v874_v21 }
  0x7f   : > { %469 = vmatmul.bf16.gmra.mxu2 %v878_v22  ;;  %489 = vmatmul.bf16.gmra.mxu3 %v882_v23 }
  0xcb   : > { %v415_v24 = vpop.f32.mrf.mxu0  ;;  %v435_v25 = vpop.f32.mrf.mxu1 }
  0xcc   : > { %v416_v27 = vadd.f32 %v1364_v26, %v415_v24  ;;  %v436_v28 = vadd.f32 %v1364_v26, %v435_v25 }
  0xce   : > { %v527_v33 = vmul.f32 0.05, %v416_v27  ;;  %v535_v34 = vmul.f32 0.05, %v436_v28  ;;  %vm495_vm0 = vcmp.gt.f32.partialorder %v416_v27, 0.0  ;;  %vm503_vm1 = vcmp.gt.f32.partialorder %v436_v28, 0.0 }
  0xd0   : > { %v559_v41 = vsel %vm495_vm0, %v416_v27, %v527_v33  ;;  %v567_v42 = vsel %vm503_vm1, %v436_v28, %v535_v34 }
  0xd2   : > { %v455_v29 = vpop.f32.mrf.mxu2  ;;  %v475_v30 = vpop.f32.mrf.mxu3 }
  0xd3   : > { %v417_v31 = vpop.f32.mrf.mxu0  ;;  %v437_v32 = vpop.f32.mrf.mxu1  ;;  %v456_v39 = vadd.f32 %v1364_v26, %v455_v29  ;;  %v476_v40 = vadd.f32 %v1364_v26, %v475_v30 }
  0xd4   : > { %v418_v35 = vadd.f32 %v1364_v26, %v417_v31  ;;  %v438_v36 = vadd.f32 %v1364_v26, %v437_v32 }
  0xd5   : > { %v543_v49 = vmul.f32 0.05, %v456_v39  ;;  %v551_v50 = vmul.f32 0.05, %v476_v40  ;;  %vm511_vm4 = vcmp.gt.f32.partialorder %v456_v39, 0.0  ;;  %vm519_vm5 = vcmp.gt.f32.partialorder %v476_v40, 0.0 }
  0xd6   : > { %vm496_vm2 = vcmp.gt.f32.partialorder %v418_v35, 0.0  ;;  %v528_v37 = vmul.f32 0.05, %v418_v35  ;;  %vm504_vm3 = vcmp.gt.f32.partialorder %v438_v36, 0.0  ;;  %v536_v38 = vmul.f32 0.05, %v438_v36 }
  0xd7   : > { %v575_v57 = vsel %vm511_vm4, %v456_v39, %v543_v49  ;;  %v583_v58 = vsel %vm519_vm5, %v476_v40, %v551_v50 }
  0xd8   : > { %v560_v43 = vsel %vm496_vm2, %v418_v35, %v528_v37  ;;  %v568_v44 = vsel %vm504_vm3, %v438_v36, %v536_v38 }
  0xd9   : > { %v895_v45 = vpack.c.bf16 %v560_v43, %v559_v41  ;;  %v915_v46 = vpack.c.bf16 %v568_v44, %v567_v42 }
  0xda   : > { %v457_v47 = vpop.f32.mrf.mxu2  ;;  %v477_v48 = vpop.f32.mrf.mxu3 }
  0xdb   : > { %896 = vst [vmem:[%s1374_s27] sm:$0xff] %v895_v45   ;;  %v458_v51 = vadd.f32 %v1364_v26, %v457_v47  ;;  %v478_v52 = vadd.f32 %v1364_v26, %v477_v48  ;;  %v420_v53 = vpop.f32.mrf.mxu0  ;;  %v440_v54 = vpop.f32.mrf.mxu1 }
  0xdc   : > { %975 = vst [vmem:[%s1374_s27 + $0x20] sm:$0xff] %v915_v46   ;;  %v421_v63 = vadd.f32 %v1364_v26, %v420_v53  ;;  %v441_v0 = vadd.f32 %v1364_v26, %v440_v54 }
  0xdd   : > { %vm512_vm6 = vcmp.gt.f32.partialorder %v458_v51, 0.0  ;;  %v544_v55 = vmul.f32 0.05, %v458_v51  ;;  %vm520_vm7 = vcmp.gt.f32.partialorder %v478_v52, 0.0  ;;  %v552_v56 = vmul.f32 0.05, %v478_v52 }
  0xde   : > { %v529_v5 = vmul.f32 0.05, %v421_v63  ;;  %v537_v6 = vmul.f32 0.05, %v441_v0  ;;  %vm497_vm8 = vcmp.gt.f32.partialorder %v421_v63, 0.0  ;;  %vm505_vm9 = vcmp.gt.f32.partialorder %v441_v0, 0.0 }
  0xdf   : > { %v576_v59 = vsel %vm512_vm6, %v458_v51, %v544_v55  ;;  %v584_v60 = vsel %vm520_vm7, %v478_v52, %v552_v56 }
  0xe0   : > { %v935_v61 = vpack.c.bf16 %v576_v59, %v575_v57  ;;  %v955_v62 = vpack.c.bf16 %v584_v60, %v583_v58  ;;  %v561_v13 = vsel %vm497_vm8, %v421_v63, %v529_v5  ;;  %v569_v14 = vsel %vm505_vm9, %v441_v0, %v537_v6 }
  0xe2   : > { %979 = vst [vmem:[%s1374_s27 + $0x40] sm:$0xff] %v935_v61   ;;  %v460_v1 = vpop.f32.mrf.mxu2  ;;  %v480_v2 = vpop.f32.mrf.mxu3 }
  0xe3   : > { %983 = vst [vmem:[%s1374_s27 + $0x60] sm:$0xff] %v955_v62   ;;  %v422_v3 = vpop.f32.mrf.mxu0  ;;  %v442_v4 = vpop.f32.mrf.mxu1  ;;  %v461_v11 = vadd.f32 %v1364_v26, %v460_v1  ;;  %v481_v12 = vadd.f32 %v1364_v26, %v480_v2 }
  0xe4   : > { %v423_v7 = vadd.f32 %v1364_v26, %v422_v3  ;;  %v443_v8 = vadd.f32 %v1364_v26, %v442_v4 }
  0xe5   : > { %v545_v21 = vmul.f32 0.05, %v461_v11  ;;  %v553_v22 = vmul.f32 0.05, %v481_v12  ;;  %vm513_vm12 = vcmp.gt.f32.partialorder %v461_v11, 0.0  ;;  %vm521_vm13 = vcmp.gt.f32.partialorder %v481_v12, 0.0 }
  0xe6   : > { %vm498_vm10 = vcmp.gt.f32.partialorder %v423_v7, 0.0  ;;  %v530_v9 = vmul.f32 0.05, %v423_v7  ;;  %vm506_vm11 = vcmp.gt.f32.partialorder %v443_v8, 0.0  ;;  %v538_v10 = vmul.f32 0.05, %v443_v8 }
  0xe7   : > { %v577_v30 = vsel %vm513_vm12, %v461_v11, %v545_v21  ;;  %v585_v31 = vsel %vm521_vm13, %v481_v12, %v553_v22 }
  0xe8   : > { %v562_v15 = vsel %vm498_vm10, %v423_v7, %v530_v9  ;;  %v570_v16 = vsel %vm506_vm11, %v443_v8, %v538_v10 }
  0xe9   : > { %v900_v17 = vpack.c.bf16 %v562_v15, %v561_v13  ;;  %v920_v18 = vpack.c.bf16 %v570_v16, %v569_v14 }
  0xea   : > { %v462_v19 = vpop.f32.mrf.mxu2  ;;  %v482_v20 = vpop.f32.mrf.mxu3 }
  0xeb   : > { %972 = vst [vmem:[%s1374_s27 + $0x8] sm:$0xff] %v900_v17   ;;  %v463_v23 = vadd.f32 %v1364_v26, %v462_v19  ;;  %v483_v24 = vadd.f32 %v1364_v26, %v482_v20  ;;  %v425_v25 = vpop.f32.mrf.mxu0  ;;  %v445_v27 = vpop.f32.mrf.mxu1 }
  0xec   : > { %976 = vst [vmem:[%s1374_s27 + $0x28] sm:$0xff] %v920_v18   ;;  %v426_v36 = vadd.f32 %v1364_v26, %v425_v25  ;;  %v446_v37 = vadd.f32 %v1364_v26, %v445_v27 }
  0xed   : > { %vm514_vm14 = vcmp.gt.f32.partialorder %v463_v23, 0.0  ;;  %v546_v28 = vmul.f32 0.05, %v463_v23  ;;  %vm522_vm15 = vcmp.gt.f32.partialorder %v483_v24, 0.0  ;;  %v554_v29 = vmul.f32 0.05, %v483_v24 }
  0xee   : > { %v531_v42 = vmul.f32 0.05, %v426_v36  ;;  %v539_v43 = vmul.f32 0.05, %v446_v37  ;;  %vm499_vm0 = vcmp.gt.f32.partialorder %v426_v36, 0.0  ;;  %vm507_vm1 = vcmp.gt.f32.partialorder %v446_v37, 0.0 }
  0xef   : > { %v578_v32 = vsel %vm514_vm14, %v463_v23, %v546_v28  ;;  %v586_v33 = vsel %vm522_vm15, %v483_v24, %v554_v29 }
  0xf0   : > { %v940_v34 = vpack.c.bf16 %v578_v32, %v577_v30  ;;  %v960_v35 = vpack.c.bf16 %v586_v33, %v585_v31  ;;  %v563_v50 = vsel %vm499_vm0, %v426_v36, %v531_v42  ;;  %v571_v51 = vsel %vm507_vm1, %v446_v37, %v539_v43 }
  0xf2   : > { %980 = vst [vmem:[%s1374_s27 + $0x48] sm:$0xff] %v940_v34   ;;  %v465_v38 = vpop.f32.mrf.mxu2  ;;  %v485_v39 = vpop.f32.mrf.mxu3 }
  0xf3   : > { %984 = vst [vmem:[%s1374_s27 + $0x68] sm:$0xff] %v960_v35   ;;  %v427_v40 = vpop.f32.mrf.mxu0  ;;  %v447_v41 = vpop.f32.mrf.mxu1  ;;  %v466_v48 = vadd.f32 %v1364_v26, %v465_v38  ;;  %v486_v49 = vadd.f32 %v1364_v26, %v485_v39 }
  0xf4   : > { %v428_v44 = vadd.f32 %v1364_v26, %v427_v40  ;;  %v448_v45 = vadd.f32 %v1364_v26, %v447_v41 }
  0xf5   : > { %v547_v58 = vmul.f32 0.05, %v466_v48  ;;  %v555_v59 = vmul.f32 0.05, %v486_v49  ;;  %vm515_vm4 = vcmp.gt.f32.partialorder %v466_v48, 0.0  ;;  %vm523_vm5 = vcmp.gt.f32.partialorder %v486_v49, 0.0 }
  0xf6   : > { %vm500_vm2 = vcmp.gt.f32.partialorder %v428_v44, 0.0  ;;  %v532_v46 = vmul.f32 0.05, %v428_v44  ;;  %vm508_vm3 = vcmp.gt.f32.partialorder %v448_v45, 0.0  ;;  %v540_v47 = vmul.f32 0.05, %v448_v45 }
  0xf7   : > { %v579_v2 = vsel %vm515_vm4, %v466_v48, %v547_v58  ;;  %v587_v3 = vsel %vm523_vm5, %v486_v49, %v555_v59 }
  0xf8   : > { %v564_v52 = vsel %vm500_vm2, %v428_v44, %v532_v46  ;;  %v572_v53 = vsel %vm508_vm3, %v448_v45, %v540_v47 }
  0xf9   : > { %v905_v54 = vpack.c.bf16 %v564_v52, %v563_v50  ;;  %v925_v55 = vpack.c.bf16 %v572_v53, %v571_v51 }
  0xfa   : > { %v467_v56 = vpop.f32.mrf.mxu2  ;;  %v487_v57 = vpop.f32.mrf.mxu3 }
  0xfb   : > { %973 = vst [vmem:[%s1374_s27 + $0x10] sm:$0xff] %v905_v54   ;;  %v468_v60 = vadd.f32 %v1364_v26, %v467_v56  ;;  %v488_v61 = vadd.f32 %v1364_v26, %v487_v57  ;;  %v430_v62 = vpop.f32.mrf.mxu0  ;;  %v450_v63 = vpop.f32.mrf.mxu1 }
  0xfc   : > { %977 = vst [vmem:[%s1374_s27 + $0x30] sm:$0xff] %v925_v55   ;;  %v431_v8 = vadd.f32 %v1364_v26, %v430_v62  ;;  %v451_v9 = vadd.f32 %v1364_v26, %v450_v63 }
  0xfd   : > { %vm516_vm6 = vcmp.gt.f32.partialorder %v468_v60, 0.0  ;;  %v548_v0 = vmul.f32 0.05, %v468_v60  ;;  %vm524_vm7 = vcmp.gt.f32.partialorder %v488_v61, 0.0  ;;  %v556_v1 = vmul.f32 0.05, %v488_v61 }
  0xfe   : > { %v533_v14 = vmul.f32 0.05, %v431_v8  ;;  %v541_v15 = vmul.f32 0.05, %v451_v9  ;;  %vm501_vm8 = vcmp.gt.f32.partialorder %v431_v8, 0.0  ;;  %vm509_vm9 = vcmp.gt.f32.partialorder %v451_v9, 0.0 }
  0xff   : > { %v580_v4 = vsel %vm516_vm6, %v468_v60, %v548_v0  ;;  %v588_v5 = vsel %vm524_vm7, %v488_v61, %v556_v1 }
 0x100   : > { %v945_v6 = vpack.c.bf16 %v580_v4, %v579_v2  ;;  %v965_v7 = vpack.c.bf16 %v588_v5, %v587_v3  ;;  %v565_v22 = vsel %vm501_vm8, %v431_v8, %v533_v14  ;;  %v573_v23 = vsel %vm509_vm9, %v451_v9, %v541_v15 }
 0x102   : > { %981 = vst [vmem:[%s1374_s27 + $0x50] sm:$0xff] %v945_v6   ;;  %v470_v10 = vpop.f32.mrf.mxu2  ;;  %v490_v11 = vpop.f32.mrf.mxu3 }
 0x103   : > { %985 = vst [vmem:[%s1374_s27 + $0x70] sm:$0xff] %v965_v7   ;;  %v432_v12 = vpop.f32.mrf.mxu0  ;;  %v452_v13 = vpop.f32.mrf.mxu1  ;;  %v471_v20 = vadd.f32 %v1364_v26, %v470_v10  ;;  %v491_v21 = vadd.f32 %v1364_v26, %v490_v11 }
 0x104   : > { %v433_v16 = vadd.f32 %v1364_v26, %v432_v12  ;;  %v453_v17 = vadd.f32 %v1364_v26, %v452_v13 }
 0x105   : > { %v549_v31 = vmul.f32 0.05, %v471_v20  ;;  %v557_v32 = vmul.f32 0.05, %v491_v21  ;;  %vm517_vm12 = vcmp.gt.f32.partialorder %v471_v20, 0.0  ;;  %vm525_vm13 = vcmp.gt.f32.partialorder %v491_v21, 0.0 }
 0x106   : > { %vm502_vm10 = vcmp.gt.f32.partialorder %v433_v16, 0.0  ;;  %v534_v18 = vmul.f32 0.05, %v433_v16  ;;  %vm510_vm11 = vcmp.gt.f32.partialorder %v453_v17, 0.0  ;;  %v542_v19 = vmul.f32 0.05, %v453_v17 }
 0x107   : > { %v581_v37 = vsel %vm517_vm12, %v471_v20, %v549_v31  ;;  %v589_v38 = vsel %vm525_vm13, %v491_v21, %v557_v32 }
 0x108   : > { %v566_v24 = vsel %vm502_vm10, %v433_v16, %v534_v18  ;;  %v574_v25 = vsel %vm510_vm11, %v453_v17, %v542_v19 }
 0x109   : > { %v910_v27 = vpack.c.bf16 %v566_v24, %v565_v22  ;;  %v930_v28 = vpack.c.bf16 %v574_v25, %v573_v23 }
 0x10a   : > { %v472_v29 = vpop.f32.mrf.mxu2  ;;  %v492_v30 = vpop.f32.mrf.mxu3 }
 0x10b   : > { %974 = vst [vmem:[%s1374_s27 + $0x18] sm:$0xff] %v910_v27   ;;  %v473_v33 = vadd.f32 %v1364_v26, %v472_v29  ;;  %v493_v34 = vadd.f32 %v1364_v26, %v492_v30 }
 0x10c   : > { %978 = vst [vmem:[%s1374_s27 + $0x38] sm:$0xff] %v930_v28  }
 0x10d   : > { %vm518_vm14 = vcmp.gt.f32.partialorder %v473_v33, 0.0  ;;  %v550_v35 = vmul.f32 0.05, %v473_v33  ;;  %vm526_vm15 = vcmp.gt.f32.partialorder %v493_v34, 0.0  ;;  %v558_v36 = vmul.f32 0.05, %v493_v34 }
 0x10f   : > { %v582_v39 = vsel %vm518_vm14, %v473_v33, %v550_v35  ;;  %v590_v40 = vsel %vm526_vm15, %v493_v34, %v558_v36 }
 0x110   : > { %v950_v41 = vpack.c.bf16 %v582_v39, %v581_v37  ;;  %v970_v42 = vpack.c.bf16 %v590_v40, %v589_v38 }
 0x112   : > { %982 = vst [vmem:[%s1374_s27 + $0x58] sm:$0xff] %v950_v41  }
 0x113   : > { %986 = vst [vmem:[%s1374_s27 + $0x78] sm:$0xff] %v970_v42  }
 0x114   : > { %1160 = shalt.err (!%p1157_p10)
}
 0x115   : > { %s1208_s6 = smov 64   ;;  %s1209_s25 = smov 4  }
 0x116   : > { %1017 = dma.vmem_to_hbm [thread:$0]  (%p1299_p3), %s669_s22, 2048, %s671_s24, %s656_s29, %s1208_s6, %s1208_s6, %s1209_s25  }
 0x117 PF: > { %s685_s18 = sand.u32 1, %s1191_s12   ;;  %p1461_p12 = scmp.ge.s32.totalorder %s1203_s15, 2 }
 0x118   : > { %s686_s23 = scalar_lea.sflag [#allocation4], %s685_s18 }
 0x119   : > { %p1028_p13 = pnand %p1461_p12, %p1265_p6 }
 0x11b   : > { %p1029_p0 = pneg %p1028_p13 }
 0x11d   : > { %1186 = dma.done.wait (%p1029_p0), %s686_s23, 2048  }
 0x11e   : > { %1188 = vsyncadd (%p1029_p0), %s686_s23, 4294965248  ;;  %p17_p5 = scmp.ge.s32.totalorder %s1283_s26, 4   ;;  %s1462_s12 = smov %s1195_s13 }
 0x11f   : > { %s1463_s13 = smov %s1199_s14  ;;  %s1464_s14 = smov %s1295_s4 }
 0x120   : > { %s1465_s15 = smov %s1283_s26  ;;  %19 = sbr.rel (!%p17_p5) target bundleno = 6 (0x6), region = 81 }
 0x125   :  { %692 = vsyncpa [#allocation3], 1 }
 0x126   :  { %694 = vsyncpa [#allocation3 + $0x1], 1 }
 0x127   :  { %695 = vsyncpa [#allocation6], 1 }
 0x128   :  { %696 = vsyncpa [#allocation4], 1 }
 0x129   :  { %698 = vsyncpa [#allocation4 + $0x1], 1 }

</bundles_post_ra>
